<compile_context>
chip_gen: v7x
topology: tpu7x:2x2x1
jax: 0.10.0
libtpu: 0.0.40
codegen_flags: <defaults>
</compile_context>

<pallas_src>
import functools

import numpy as np
import jax
import jax.numpy as jnp
from jax.experimental import pallas as pl
from jax.experimental.pallas import tpu as pltpu


def _round_up(a, b):
    return ((a + b - 1) // b) * b


def _cdiv(a, b):
    return (a + b - 1) // b


def _ldam_kernel(x_ref, tgt_ref, m_ref, w_ref, num_out_ref, den_out_ref,
                 num_acc, den_acc, *, s, true_b, tb, tiles_per_shard):
    shard = pl.program_id(0)
    step = pl.program_id(1)

    @pl.when(step == 0)
    def _():
        num_acc[...] = jnp.zeros_like(num_acc)
        den_acc[...] = jnp.zeros_like(den_acc)

    # Stream x in its native dtype; upcast per tile inside the kernel.
    x = x_ref[...].astype(jnp.float32)          # (TB, C)
    tgt = tgt_ref[...]                          # (TB, 1) int32
    m_list = m_ref[...]                         # (1, C)  f32
    w_list = w_ref[...]                         # (1, C)  f32

    TB, C = x.shape
    col = jax.lax.broadcasted_iota(jnp.int32, (TB, C), 1)
    onehot = (col == tgt).astype(jnp.float32)   # (TB, C) one-hot of target

    # Row gathers as masked lane reductions (VPU + XLU); no MXU.
    batch_m = jnp.sum(m_list * onehot, axis=1, keepdims=True)   # (TB, 1)
    x_tgt = jnp.sum(x * onehot, axis=1, keepdims=True)          # (TB, 1)
    w_i = jnp.sum(w_list * onehot, axis=1, keepdims=True)       # (TB, 1)

    # Fused margin: only the target column is shifted by -batch_m.
    z = s * (x - batch_m * onehot)                               # (TB, C)

    # Numerically stable log-sum-exp cross entropy.
    zmax = jnp.max(z, axis=1, keepdims=True)                     # (TB, 1)
    lse = zmax + jnp.log(jnp.sum(jnp.exp(z - zmax), axis=1, keepdims=True))
    z_target = s * (x_tgt - batch_m)                             # (TB, 1)
    per_sample = lse - z_target                                  # (TB, 1)

    # Mask rows that are batch padding (last tile / empty shard).
    row = jax.lax.broadcasted_iota(jnp.int32, (TB, 1), 0)
    global_row = (shard * tiles_per_shard + step) * tb + row
    valid = (global_row < true_b).astype(jnp.float32)
    w_i = w_i * valid
    per_sample = per_sample * valid

    num_acc[...] += jnp.sum(w_i * per_sample, axis=0, keepdims=True)
    den_acc[...] += jnp.sum(w_i, axis=0, keepdims=True)

    # Write the per-shard partials exactly once.
    @pl.when(step == pl.num_programs(1) - 1)
    def _():
        num_out_ref[...] = num_acc[...].reshape(1, 1, 1)
        den_out_ref[...] = den_acc[...].reshape(1, 1, 1)


def ldam_loss(x, target, m_list, weight=None, s=30.0, block_rows=None):
    """x: (B, C) float (any float dtype); target: (B,) int; m_list: (C,);
    weight: (C,) or None. Returns scalar weighted-mean LDAM loss."""
    B, C = x.shape
    tgt = target.astype(jnp.int32).reshape(B, 1)
    m = m_list.astype(jnp.float32).reshape(1, C)
    w = jnp.ones((C,), jnp.float32) if weight is None else weight.astype(jnp.float32)
    w = w.reshape(1, C)

    # Tile rows: as large as possible up to 512, capped so one x tile
    # stays <= ~8 MiB in the caller's dtype (double-buffered -> <= 16 MiB).
    if block_rows is not None:
        TB = _round_up(int(block_rows), 8)
    else:
        bytes_per_row = max(1, C * jnp.dtype(x.dtype).itemsize)
        tb_cap = max(8, ((8 * 1024 * 1024) // bytes_per_row // 8) * 8)
        TB = min(_round_up(B, 8), 512, tb_cap)

    total_tiles = _cdiv(B, TB)
    num_shards = 2 if total_tiles >= 2 else 1      # v7x: 2 TensorCores
    tiles_per_shard = _cdiv(total_tiles, num_shards)
    B_pad = num_shards * tiles_per_shard * TB

    if B_pad > B:
        x = jnp.pad(x, ((0, B_pad - B), (0, 0)))
        tgt = jnp.pad(tgt, ((0, B_pad - B), (0, 0)))

    kernel = functools.partial(
        _ldam_kernel, s=float(s), true_b=B, tb=TB,
        tiles_per_shard=tiles_per_shard)

    num_parts, den_parts = pl.pallas_call(
        kernel,
        out_shape=(
            jax.ShapeDtypeStruct((num_shards, 1, 1), jnp.float32),
            jax.ShapeDtypeStruct((num_shards, 1, 1), jnp.float32),
        ),
        grid=(num_shards, tiles_per_shard),
        in_specs=[
            pl.BlockSpec((TB, C), lambda c, i: (c * tiles_per_shard + i, 0)),
            pl.BlockSpec((TB, 1), lambda c, i: (c * tiles_per_shard + i, 0)),
            pl.BlockSpec((1, C), lambda c, i: (0, 0)),   # m_list stays resident
            pl.BlockSpec((1, C), lambda c, i: (0, 0)),   # weight stays resident
        ],
        out_specs=(
            pl.BlockSpec((1, 1, 1), lambda c, i: (c, 0, 0)),
            pl.BlockSpec((1, 1, 1), lambda c, i: (c, 0, 0)),
        ),
        scratch_shapes=[
            pltpu.VMEM((1, 1), jnp.float32),   # num accumulator
            pltpu.VMEM((1, 1), jnp.float32),   # den accumulator
        ],
        compiler_params=pltpu.CompilerParams(
            dimension_semantics=("parallel", "arbitrary"),
            vmem_limit_bytes=32 * 1024 * 1024,
        ),
    )(x, tgt, m, w)

    # Tiny cross-shard reduce + divide in the wrapper.
    return jnp.sum(num_parts) / jnp.sum(den_parts)


def make_m_list(cls_num_list, max_m=0.5):
    m = 1.0 / np.sqrt(np.sqrt(np.asarray(cls_num_list, dtype=np.float32)))
    m = m * (max_m / np.max(m))
    return jnp.asarray(m, dtype=jnp.float32)


def _reference(x, target, m_list, weight, s):
    # Pure-JAX reference for sanity checking.
    B, C = x.shape
    onehot = jax.nn.one_hot(target, C, dtype=jnp.float32)
    batch_m = (onehot * m_list[None, :]).sum(-1, keepdims=True)
    out = jnp.where(onehot > 0, x - batch_m, x)
    z = s * out
    logp = jax.nn.log_softmax(z, axis=-1)
    per = -(onehot * logp).sum(-1)
    w = jnp.ones((C,), jnp.float32) if weight is None else weight
    wi = w[target]
    return (wi * per).sum() / wi.sum()


if __name__ == "__main__":
    key = jax.random.PRNGKey(0)
    B, C = 28, 16  # batch (non-multiple of 8 to exercise padding mask), classes

    # deterministic synthetic class-count list (module __init__ argument)
    cls_num_list = [100, 80, 60, 50, 40, 30, 25, 20, 15, 12, 10, 8, 6, 5, 4, 3]
    m_list = make_m_list(cls_num_list, max_m=0.5)

    kx, kt, kw = jax.random.split(key, 3)
    x = jax.random.normal(kx, (B, C), dtype=jnp.float32)
    target = jax.random.randint(kt, (B,), 0, C, dtype=jnp.int32)
    weight = jax.random.uniform(kw, (C,), dtype=jnp.float32, minval=0.5, maxval=1.5)

    # 1) default tiling, unweighted
    loss = jax.block_until_ready(ldam_loss(x, target, m_list, weight=None, s=30.0))
    ref = _reference(x, target, m_list, None, 30.0)
    assert jnp.allclose(loss, ref, rtol=1e-5, atol=1e-5), (loss, ref)

    # 2) small tiles -> multi-tile, 2-shard grid (exercises accumulation,
    #    megacore-style partials and the padded-row mask), weighted
    loss2 = jax.block_until_ready(
        ldam_loss(x, target, m_list, weight=weight, s=30.0, block_rows=8))
    ref2 = _reference(x, target, m_list, weight, 30.0)
    assert jnp.allclose(loss2, ref2, rtol=1e-5, atol=1e-5), (loss2, ref2)

    # 3) bf16 logits streamed natively, upcast per-tile inside the kernel
    xb = x.astype(jnp.bfloat16)
    loss3 = jax.block_until_ready(ldam_loss(xb, target, m_list, weight=None, s=30.0))
    ref3 = _reference(xb.astype(jnp.float32), target, m_list, None, 30.0)
    assert jnp.allclose(loss3, ref3, rtol=1e-4, atol=1e-4), (loss3, ref3)

    print("KERNEL_OK")
</pallas_src>

<mosaic_0001>
module attributes {stable_mosaic.version = 11 : i64} {
  func.func @_ldam_kernel(%arg0: i32, %arg1: i32, %arg2: memref<32x16xf32, #tpu.memory_space<vmem>>, %arg3: memref<32x1xi32, #tpu.memory_space<vmem>>, %arg4: memref<1x16xf32, #tpu.memory_space<vmem>>, %arg5: memref<1x16xf32, #tpu.memory_space<vmem>>, %arg6: memref<1x1x1xf32, #tpu.memory_space<vmem>>, %arg7: memref<1x1x1xf32, #tpu.memory_space<vmem>>, %arg8: memref<1x1xf32, #tpu.memory_space<vmem>>, %arg9: memref<1x1xf32, #tpu.memory_space<vmem>>) attributes {dimension_semantics = [#tpu.dimension_semantics<parallel>, #tpu.dimension_semantics<arbitrary>], iteration_bounds = array<i64: 1, 1>, scalar_prefetch = 0 : i64, scratch_operands = 2 : i64, tpu.core_type = #tpu.core_type<tc>, window_params = [{transform_indices = @transform_0, window_bounds = array<i64: 32, 16>}, {transform_indices = @transform_1, window_bounds = array<i64: 32, 1>}, {pipeline_mode = #tpu.pipeline_mode<synchronous>, transform_indices = @transform_2, window_bounds = array<i64: 1, 16>}, {pipeline_mode = #tpu.pipeline_mode<synchronous>, transform_indices = @transform_3, window_bounds = array<i64: 1, 16>}, {transform_indices = @transform_4, window_bounds = array<i64: 1, 1, 1>}, {transform_indices = @transform_5, window_bounds = array<i64: 1, 1, 1>}]} {
    %c0_i32 = arith.constant 0 : i32
    %0 = arith.cmpi eq, %arg1, %c0_i32 : i32
    %1 = arith.extui %0 : i1 to i32
    %c0_i32_0 = arith.constant 0 : i32
    %2 = arith.cmpi ne, %1, %c0_i32_0 : i32
    scf.if %2 {
      %cst_26 = arith.constant 0.000000e+00 : f32
      %67 = vector.broadcast %cst_26 : f32 to vector<1x1xf32>
      %c0_27 = arith.constant 0 : index
      %c0_28 = arith.constant 0 : index
      %68 = vector.load %arg8[%c0_27, %c0_28] : memref<1x1xf32, #tpu.memory_space<vmem>>, vector<1x1xf32>
      tpu.vector_store %arg8[%c0_27, %c0_28], %67 {strides = array<i32>} : memref<1x1xf32, #tpu.memory_space<vmem>>, vector<1x1xf32>,
      %cst_29 = arith.constant 0.000000e+00 : f32
      %69 = vector.broadcast %cst_29 : f32 to vector<1x1xf32>
      %c0_30 = arith.constant 0 : index
      %c0_31 = arith.constant 0 : index
      %70 = vector.load %arg9[%c0_30, %c0_31] : memref<1x1xf32, #tpu.memory_space<vmem>>, vector<1x1xf32>
      tpu.vector_store %arg9[%c0_30, %c0_31], %69 {strides = array<i32>} : memref<1x1xf32, #tpu.memory_space<vmem>>, vector<1x1xf32>,
    } else {
    }
    %c0 = arith.constant 0 : index
    %c0_1 = arith.constant 0 : index
    %3 = vector.load %arg2[%c0, %c0_1] : memref<32x16xf32, #tpu.memory_space<vmem>>, vector<32x16xf32>
    %c0_2 = arith.constant 0 : index
    %c0_3 = arith.constant 0 : index
    %4 = vector.load %arg3[%c0_2, %c0_3] : memref<32x1xi32, #tpu.memory_space<vmem>>, vector<32x1xi32>
    %c0_4 = arith.constant 0 : index
    %c0_5 = arith.constant 0 : index
    %5 = vector.load %arg4[%c0_4, %c0_5] : memref<1x16xf32, #tpu.memory_space<vmem>>, vector<1x16xf32>
    %c0_6 = arith.constant 0 : index
    %c0_7 = arith.constant 0 : index
    %6 = vector.load %arg5[%c0_6, %c0_7] : memref<1x16xf32, #tpu.memory_space<vmem>>, vector<1x16xf32>
    %7 = tpu.iota {dimensions = array<i32: 1>} : vector<32x16xi32>
    %8 = vector.broadcast %4 : vector<32x1xi32> to vector<32x16xi32>
    %9 = arith.cmpi eq, %7, %8 : vector<32x16xi32>
    %10 = arith.extui %9 : vector<32x16xi1> to vector<32x16xi32>
    %11 = arith.sitofp %10 : vector<32x16xi32> to vector<32x16xf32>
    %12 = vector.broadcast %5 : vector<1x16xf32> to vector<32x16xf32>
    %13 = arith.mulf %12, %11 : vector<32x16xf32>
    %cst = arith.constant dense<0.000000e+00> : vector<32xf32>
    %14 = vector.multi_reduction <add>, %13, %cst [1] : vector<32x16xf32> to vector<32xf32>
    %15 = vector.shape_cast %14 : vector<32xf32> to vector<32x1xf32>
    %16 = arith.mulf %3, %11 : vector<32x16xf32>
    %cst_8 = arith.constant dense<0.000000e+00> : vector<32xf32>
    %17 = vector.multi_reduction <add>, %16, %cst_8 [1] : vector<32x16xf32> to vector<32xf32>
    %18 = vector.shape_cast %17 : vector<32xf32> to vector<32x1xf32>
    %19 = vector.broadcast %6 : vector<1x16xf32> to vector<32x16xf32>
    %20 = arith.mulf %19, %11 : vector<32x16xf32>
    %cst_9 = arith.constant dense<0.000000e+00> : vector<32xf32>
    %21 = vector.multi_reduction <add>, %20, %cst_9 [1] : vector<32x16xf32> to vector<32xf32>
    %22 = vector.shape_cast %21 : vector<32xf32> to vector<32x1xf32>
    %23 = vector.broadcast %15 : vector<32x1xf32> to vector<32x16xf32>
    %24 = arith.mulf %23, %11 : vector<32x16xf32>
    %25 = arith.subf %3, %24 : vector<32x16xf32>
    %cst_10 = arith.constant 3.000000e+01 : f32
    %26 = vector.broadcast %cst_10 : f32 to vector<32x16xf32>
    %27 = arith.mulf %26, %25 : vector<32x16xf32>
    %cst_11 = arith.constant dense<0xFF800000> : vector<32xf32>
    %28 = vector.multi_reduction <maximumf>, %27, %cst_11 [1] : vector<32x16xf32> to vector<32xf32>
    %29 = vector.shape_cast %28 : vector<32xf32> to vector<32x1xf32>
    %30 = vector.broadcast %29 : vector<32x1xf32> to vector<32x16xf32>
    %31 = arith.subf %27, %30 : vector<32x16xf32>
    %32 = math.exp %31 : vector<32x16xf32>
    %cst_12 = arith.constant dense<0.000000e+00> : vector<32xf32>
    %33 = vector.multi_reduction <add>, %32, %cst_12 [1] : vector<32x16xf32> to vector<32xf32>
    %34 = vector.shape_cast %33 : vector<32xf32> to vector<32x1xf32>
    %35 = math.log %34 : vector<32x1xf32>
    %36 = arith.addf %29, %35 : vector<32x1xf32>
    %37 = arith.subf %18, %15 : vector<32x1xf32>
    %cst_13 = arith.constant 3.000000e+01 : f32
    %38 = vector.broadcast %cst_13 : f32 to vector<32x1xf32>
    %39 = arith.mulf %38, %37 : vector<32x1xf32>
    %40 = arith.subf %36, %39 : vector<32x1xf32>
    %41 = tpu.iota {dimensions = array<i32: 0>} : vector<32x1xi32>
    %c1_i32 = arith.constant 1 : i32
    %42 = arith.muli %arg0, %c1_i32 : i32
    %43 = arith.addi %42, %arg1 : i32
    %c32_i32 = arith.constant 32 : i32
    %44 = arith.muli %43, %c32_i32 : i32
    %45 = vector.broadcast %44 : i32 to vector<32x1xi32>
    %46 = arith.addi %45, %41 : vector<32x1xi32>
    %c28_i32 = arith.constant 28 : i32
    %47 = vector.broadcast %c28_i32 : i32 to vector<32x1xi32>
    %48 = arith.cmpi slt, %46, %47 : vector<32x1xi32>
    %49 = arith.extui %48 : vector<32x1xi1> to vector<32x1xi32>
    %50 = arith.sitofp %49 : vector<32x1xi32> to vector<32x1xf32>
    %51 = arith.mulf %22, %50 : vector<32x1xf32>
    %52 = arith.mulf %40, %50 : vector<32x1xf32>
    %c0_14 = arith.constant 0 : index
    %c0_15 = arith.constant 0 : index
    %53 = vector.load %arg8[%c0_14, %c0_15] : memref<1x1xf32, #tpu.memory_space<vmem>>, vector<1x1xf32>
    %54 = arith.mulf %51, %52 : vector<32x1xf32>
    %cst_16 = arith.constant dense<0.000000e+00> : vector<1xf32>
    %55 = vector.multi_reduction <add>, %54, %cst_16 [0] : vector<32x1xf32> to vector<1xf32>
    %56 = vector.shape_cast %55 : vector<1xf32> to vector<1x1xf32>
    %57 = arith.addf %53, %56 : vector<1x1xf32>
    %c0_17 = arith.constant 0 : index
    %c0_18 = arith.constant 0 : index
    %58 = vector.load %arg8[%c0_17, %c0_18] : memref<1x1xf32, #tpu.memory_space<vmem>>, vector<1x1xf32>
    tpu.vector_store %arg8[%c0_17, %c0_18], %57 {strides = array<i32>} : memref<1x1xf32, #tpu.memory_space<vmem>>, vector<1x1xf32>,
    %c0_19 = arith.constant 0 : index
    %c0_20 = arith.constant 0 : index
    %59 = vector.load %arg9[%c0_19, %c0_20] : memref<1x1xf32, #tpu.memory_space<vmem>>, vector<1x1xf32>
    %cst_21 = arith.constant dense<0.000000e+00> : vector<1xf32>
    %60 = vector.multi_reduction <add>, %51, %cst_21 [0] : vector<32x1xf32> to vector<1xf32>
    %61 = vector.shape_cast %60 : vector<1xf32> to vector<1x1xf32>
    %62 = arith.addf %59, %61 : vector<1x1xf32>
    %c0_22 = arith.constant 0 : index
    %c0_23 = arith.constant 0 : index
    %63 = vector.load %arg9[%c0_22, %c0_23] : memref<1x1xf32, #tpu.memory_space<vmem>>, vector<1x1xf32>
    tpu.vector_store %arg9[%c0_22, %c0_23], %62 {strides = array<i32>} : memref<1x1xf32, #tpu.memory_space<vmem>>, vector<1x1xf32>,
    %c0_i32_24 = arith.constant 0 : i32
    %64 = arith.cmpi eq, %arg1, %c0_i32_24 : i32
    %65 = arith.extui %64 : i1 to i32
    %c0_i32_25 = arith.constant 0 : i32
    %66 = arith.cmpi ne, %65, %c0_i32_25 : i32
    scf.if %66 {
      %c0_26 = arith.constant 0 : index
      %c0_27 = arith.constant 0 : index
      %67 = vector.load %arg8[%c0_26, %c0_27] : memref<1x1xf32, #tpu.memory_space<vmem>>, vector<1x1xf32>
      %68 = vector.shape_cast %67 : vector<1x1xf32> to vector<1x1x1xf32>
      %c0_28 = arith.constant 0 : index
      %c0_29 = arith.constant 0 : index
      %c0_30 = arith.constant 0 : index
      %69 = vector.load %arg6[%c0_28, %c0_29, %c0_30] : memref<1x1x1xf32, #tpu.memory_space<vmem>>, vector<1x1x1xf32>
      tpu.vector_store %arg6[%c0_28, %c0_29, %c0_30], %68 {strides = array<i32>} : memref<1x1x1xf32, #tpu.memory_space<vmem>>, vector<1x1x1xf32>,
      %c0_31 = arith.constant 0 : index
      %c0_32 = arith.constant 0 : index
      %70 = vector.load %arg9[%c0_31, %c0_32] : memref<1x1xf32, #tpu.memory_space<vmem>>, vector<1x1xf32>
      %71 = vector.shape_cast %70 : vector<1x1xf32> to vector<1x1x1xf32>
      %c0_33 = arith.constant 0 : index
      %c0_34 = arith.constant 0 : index
      %c0_35 = arith.constant 0 : index
      %72 = vector.load %arg7[%c0_33, %c0_34, %c0_35] : memref<1x1x1xf32, #tpu.memory_space<vmem>>, vector<1x1x1xf32>
      tpu.vector_store %arg7[%c0_33, %c0_34, %c0_35], %71 {strides = array<i32>} : memref<1x1x1xf32, #tpu.memory_space<vmem>>, vector<1x1x1xf32>,
    } else {
    }
    return
  }
  func.func @transform_0(%arg0: i32, %arg1: i32) -> (i32, i32) {
    %c1_i32 = arith.constant 1 : i32
    %0 = arith.muli %arg0, %c1_i32 : i32
    %1 = arith.addi %0, %arg1 : i32
    %c0_i32 = arith.constant 0 : i32
    %c0_i32_0 = arith.constant 0 : i32
    return %1, %c0_i32 : i32, i32
  }
  func.func @transform_1(%arg0: i32, %arg1: i32) -> (i32, i32) {
    %c1_i32 = arith.constant 1 : i32
    %0 = arith.muli %arg0, %c1_i32 : i32
    %1 = arith.addi %0, %arg1 : i32
    %c0_i32 = arith.constant 0 : i32
    %c0_i32_0 = arith.constant 0 : i32
    return %1, %c0_i32 : i32, i32
  }
  func.func @transform_2(%arg0: i32, %arg1: i32) -> (i32, i32) {
    %c0_i32 = arith.constant 0 : i32
    %c0_i32_0 = arith.constant 0 : i32
    %c0_i32_1 = arith.constant 0 : i32
    return %c0_i32, %c0_i32_0 : i32, i32
  }
  func.func @transform_3(%arg0: i32, %arg1: i32) -> (i32, i32) {
    %c0_i32 = arith.constant 0 : i32
    %c0_i32_0 = arith.constant 0 : i32
    %c0_i32_1 = arith.constant 0 : i32
    return %c0_i32, %c0_i32_0 : i32, i32
  }
  func.func @transform_4(%arg0: i32, %arg1: i32) -> (i32, i32, i32) {
    %c0_i32 = arith.constant 0 : i32
    %c0_i32_0 = arith.constant 0 : i32
    %c0_i32_1 = arith.constant 0 : i32
    return %arg0, %c0_i32, %c0_i32_0 : i32, i32, i32
  }
  func.func @transform_5(%arg0: i32, %arg1: i32) -> (i32, i32, i32) {
    %c0_i32 = arith.constant 0 : i32
    %c0_i32_0 = arith.constant 0 : i32
    %c0_i32_1 = arith.constant 0 : i32
    return %arg0, %c0_i32, %c0_i32_0 : i32, i32, i32
  }
}

</mosaic_0001>

<bundles_post_ra>
// kernel: tpu_custom_call.1
= control target key start
LH: loop header
LB: loop body
LE: loop exit
PB: predicated region body
PF: predicated region fallthrough
CT: control target
= control target key end

     0   :  { %11 = vsyncpa [#allocation5], 0  ;;  %v426_v2 = vmov 0   ;;  %s613_s0 = inlined_call_operand.vmem [shape: f32[32,16], index: 0, kind: input, shape index: {}]   ;;  %s614_s1 = inlined_call_operand.vmem [shape: s32[32,1], index: 1, kind: input, shape index: {}]   ;;  %s615_s2 = inlined_call_operand.vmem [shape: f32[1,16], index: 2, kind: input, shape index: {}]   ;;  %s616_s3 = inlined_call_operand.vmem [shape: f32[1,16], index: 3, kind: input, shape index: {}]   ;;  %s617_s4 = inlined_call_operand.hbm [shape: f32[1,1,1], index: 4, kind: output, shape index: {0}]   ;;  %s618_s5 = inlined_call_operand.hbm [shape: f32[1,1,1], index: 5, kind: output, shape index: {1}]  }
   0x1   :  { %v78_v0 = vld [vmem:[%s614_s1 + $0x10] sm:$0xff]  ;;  %v76_v1 = vld [vmem:[%s614_s1] sm:$0xff]  ;;  %361 = vset.pattern.permute.xlu1 %v426_v2  ;;  %360 = vset.pattern.permute.xlu0 %v426_v2 }
   0x2   :  { %12 = vsyncpa [#allocation7], 0  ;;  %91 = vperm.xlu1 %361, %v78_v0   ;;  %85 = vperm.xlu0 %360, %v76_v1   ;;  %v79_v3 = vld [vmem:[%s614_s1 + $0x18] sm:$0xff]  ;;  %v77_v4 = vld [vmem:[%s614_s1 + $0x8] sm:$0xff]  ;;  %v82_v5 = vlaneseq  ;;  %v427_v10 = vmov 0.0   ;;  %vm118_vm2 = vcmask 130048  }
   0x3   :  { %v353_v9 = vld [vmem:[%s615_s2] ss:$0 sm:$0xff]  ;;  %v73_v34 = vld [vmem:[%s613_s0 + $0x8] sm:$0xff]  ;;  %v74_v35 = vld [vmem:[%s613_s0 + $0x10] sm:$0xff]  ;;  %vm69_vm5 = vcmask 0   ;;  %s429_s11 = smov [#allocation4]  }
   0x4   :  { %v83_v6 = vand.u32 127, %v82_v5  ;;  %v72_v27 = vld [vmem:[%s613_s0] sm:$0xff]  ;;  %v75_v43 = vld [vmem:[%s613_s0 + $0x18] sm:$0xff]  ;;  %70 = vst.msk [vmem:[#allocation2] sm:$0x1] %vm69_vm5, %v427_v10  ;;  %s315_s12 = sshll.u32 %s429_s11, 4  ;;  %s579_s12 = int_to_ptr.vmem [resolvable:$true] %s315_s12 }
   0x5   :  { %71 = vst.msk [vmem:[#allocation3] sm:$0x1] %vm69_vm5, %v427_v10 }
   0x6   :  { %94 = vperm.xlu1 %361, %v79_v3   ;;  %88 = vperm.xlu0 %360, %v77_v4  }
  0x81   :  { %v92_v7 = vpop.permute.xlu1 %91  ;;  %v86_v8 = vpop.permute.xlu0 %85 }
  0x82   :  { %vm98_vm0 = vcmp.eq.s32.totalorder %v83_v6, %v92_v7  ;;  %vm96_vm1 = vcmp.eq.s32.totalorder %v83_v6, %v86_v8 }
  0x83   :  { %v477_v11 = vsel %vm98_vm0, 1.0, %v427_v10  ;;  %v480_v12 = vsel %vm96_vm1, 1.0, %v427_v10 }
  0x84   :  { %v114_v13 = vmul.f32 %v353_v9, %v480_v12  ;;  %v116_v14 = vmul.f32 %v353_v9, %v477_v11  ;;  %v131_v2 = vmul.f32 %v480_v12, %v72_v27  ;;  %v133_v8 = vmul.f32 %v477_v11, %v74_v35 }
  0x85   :  { %v95_v15 = vpop.permute.xlu1 %94  ;;  %v89_v16 = vpop.permute.xlu0 %88 }
  0x86   :  { %vm99_vm3 = vcmp.eq.s32.totalorder %v83_v6, %v95_v15  ;;  %vm97_vm4 = vcmp.eq.s32.totalorder %v83_v6, %v89_v16  ;;  %v119_v17 = vsel %vm118_vm2, %v114_v13, 0.0  ;;  %v125_v21 = vsel %vm118_vm2, %v116_v14, 0.0  ;;  %v354_v13 = vld [vmem:[%s616_s3] ss:$0 sm:$0xff]  ;;  %s428_s3 = smov [#allocation6]  }
  0x87   :  { %v486_v18 = vsel %vm99_vm3, 1.0, %v427_v10  ;;  %v489_v19 = vsel %vm97_vm4, 1.0, %v427_v10  ;;  %120 = vadd.xlane.f32.xlu0 %v119_v17  ;;  %v135_v6 = vsel %vm118_vm2, %v131_v2, 0.0  ;;  %v141_v14 = vsel %vm118_vm2, %v133_v8, 0.0  ;;  %s325_s10 = sshll.u32 %s428_s3, 4  ;;  %s326_s10 = int_to_ptr.vmem [resolvable:$true] %s325_s10 }
  0x88   :  { %v115_v20 = vmul.f32 %v353_v9, %v489_v19  ;;  %v117_v23 = vmul.f32 %v353_v9, %v486_v18  ;;  %v132_v9 = vmul.f32 %v489_v19, %v73_v34  ;;  %v153_v15 = vmul.f32 %v354_v13, %v480_v12  ;;  %s378_s13 = scalar_lea.vmem %s326_s10, 16  ;;  %s382_s14 = scalar_lea.vmem %s326_s10, 32 }
  0x89   :  { %v134_v17 = vmul.f32 %v486_v18, %v75_v43  ;;  %p379_p0 = scmp.ne.s32.totalorder %s326_s10, %s378_s13  ;;  %p383_p1 = scmp.lt.s32.totalorder %s326_s10, %s326_s10 }
  0x8a   :  { %v122_v22 = vsel %vm118_vm2, %v115_v20, 0.0  ;;  %v128_v24 = vsel %vm118_vm2, %v117_v23, 0.0  ;;  %v138_v16 = vsel %vm118_vm2, %v132_v9, 0.0  ;;  %v157_v20 = vsel %vm118_vm2, %v153_v15, 0.0  ;;  %p384_p2 = scmp.lt.s32.totalorder %s382_s14, %s378_s13 }
  0x8b   :  { %123 = vadd.xlane.f32.xlu1 %v122_v22  ;;  %126 = vadd.xlane.f32.xlu0 %v125_v21  ;;  %v155_v21 = vmul.f32 %v354_v13, %v477_v11  ;;  %v144_v22 = vsel %vm118_vm2, %v134_v17, 0.0  ;;  %v154_v23 = vmul.f32 %v354_v13, %v489_v19 }
  0x8c   :  { %p385_p3 = por %p384_p2, %p383_p1 }
  0x8e   :  { %p386_p4 = pnand %p385_p3, %p379_p0 }
  0x8f   :  { %129 = vadd.xlane.f32.xlu0 %v128_v24  ;;  %v163_v24 = vsel %vm118_vm2, %v155_v21, 0.0 }
 0x114   :  { %v496_v25 = vpop.xlane.xlu0 %120 }
 0x115   :  { %v169_v26 = vmul.f32 %v480_v12, %v496_v25  ;;  %v160_v12 = vsel %vm118_vm2, %v154_v23, 0.0 }
 0x117   :  { %v173_v28 = vsub.f32 %v72_v27, %v169_v26  ;;  %v156_v26 = vmul.f32 %v354_v13, %v486_v18 }
 0x118   :  { %v503_v29 = vpop.xlane.xlu1 %123  ;;  %v505_v30 = vpop.xlane.xlu0 %126 }
 0x119   :  { %v170_v31 = vmul.f32 %v489_v19, %v503_v29  ;;  %v171_v32 = vmul.f32 %v477_v11, %v505_v30  ;;  %v177_v33 = vmul.f32 30.0, %v173_v28  ;;  %v166_v27 = vsel %vm118_vm2, %v156_v26, 0.0 }
 0x11b   :  { %v181_v36 = vsel %vm118_vm2, %v177_v33, -inf  ;;  %v174_v37 = vsub.f32 %v73_v34, %v170_v31  ;;  %v175_v38 = vsub.f32 %v74_v35, %v171_v32 }
 0x11c   :  { %182 = vmax.xlane.f32.xlu1 %v181_v36  ;;  %v518_v39 = vpop.xlane.xlu0 %129 }
 0x11d   :  { %v172_v40 = vmul.f32 %v486_v18, %v518_v39  ;;  %v178_v41 = vmul.f32 30.0, %v174_v37  ;;  %v179_v42 = vmul.f32 30.0, %v175_v38  ;;  %v242_v18 = vshrl.u32 %v82_v5, 7 }
 0x11f   :  { %v184_v44 = vsel %vm118_vm2, %v178_v41, -inf  ;;  %v187_v45 = vsel %vm118_vm2, %v179_v42, -inf  ;;  %v176_v46 = vsub.f32 %v75_v43, %v172_v40  ;;  %v245_v40 = vadd.s32 24, %v242_v18 }
 0x120   :  { %185 = vmax.xlane.f32.xlu0 %v184_v44  ;;  %188 = vmax.xlane.f32.xlu1 %v187_v45 }
 0x121   :  { %v180_v47 = vmul.f32 30.0, %v176_v46  ;;  %vm256_vm6 = vcmp.lt.s32.totalorder %v245_v40, 28 }
 0x123   :  { %v190_v48 = vsel %vm118_vm2, %v180_v47, -inf }
 0x124   :  { %191 = vmax.xlane.f32.xlu0 %v190_v48 }
 0x1a9   :  { %v528_v49 = vpop.xlane.xlu1 %182 }
 0x1aa   :  { %v193_v50 = vsub.f32 %v177_v33, %v528_v49 }
 0x1ac   :  { %v197_v51 = vmul.f32 1.442695, %v193_v50 }
 0x1ad   :  { %v531_v52 = vpop.xlane.xlu1 %188  ;;  %v533_v53 = vpop.xlane.xlu0 %185 }
 0x1ae   :  { %362 = vpow2.f32 %v197_v51  ;;  %v195_v54 = vsub.f32 %v179_v42, %v531_v52  ;;  %v194_v55 = vsub.f32 %v178_v41, %v533_v53 }
 0x1b0   :  { %v201_v56 = vmul.f32 1.442695, %v195_v54  ;;  %v199_v57 = vmul.f32 1.442695, %v194_v55 }
 0x1b1   :  { %v537_v58 = vpop.xlane.xlu0 %191 }
 0x1b2   :  { %364 = vpow2.f32 %v201_v56  ;;  %v196_v59 = vsub.f32 %v180_v47, %v537_v58 }
 0x1b3   :  { %366 = vpow2.f32 %v199_v57 }
 0x1b4   :  { %v203_v60 = vmul.f32 1.442695, %v196_v59 }
 0x1b6   :  { %368 = vpow2.f32 %v203_v60 }
 0x1b8   :  { %v363_v61 = vpop.eup %362 }
 0x1b9   :  { %v205_v62 = vsel %vm118_vm2, %v363_v61, 0.0 }
 0x1ba   :  { %206 = vadd.xlane.f32.xlu1 %v205_v62 }
 0x1bc   :  { %v365_v63 = vpop.eup %364 }
 0x1bd   :  { %v367_v0 = vpop.eup %366  ;;  %v211_v1 = vsel %vm118_vm2, %v365_v63, 0.0 }
 0x1be   :  { %212 = vadd.xlane.f32.xlu1 %v211_v1  ;;  %v208_v3 = vsel %vm118_vm2, %v367_v0, 0.0 }
 0x1bf   :  { %209 = vadd.xlane.f32.xlu0 %v208_v3 }
 0x1c0   :  { %v369_v4 = vpop.eup %368 }
 0x1c1   :  { %v214_v7 = vsel %vm118_vm2, %v369_v4, 0.0 }
 0x1c2   :  { %136 = vadd.xlane.f32.xlu1 %v135_v6 }
 0x1c3   :  { %215 = vadd.xlane.f32.xlu0 %v214_v7 }
 0x1c6   :  { %142 = vadd.xlane.f32.xlu1 %v141_v14 }
 0x1c7   :  { %139 = vadd.xlane.f32.xlu0 %v138_v16 }
 0x1ca   :  { %158 = vadd.xlane.f32.xlu1 %v157_v20 }
 0x1cb   :  { %145 = vadd.xlane.f32.xlu0 %v144_v22 }
 0x1ce   :  { %164 = vadd.xlane.f32.xlu1 %v163_v24  ;;  %v290_v24 = vld [vmem:[#allocation3] sm:$0x1] }
 0x1cf   :  { %161 = vadd.xlane.f32.xlu0 %v160_v12 }
 0x1d3   :  { %167 = vadd.xlane.f32.xlu0 %v166_v27  ;;  %v273_v27 = vld [vmem:[#allocation2] sm:$0x1] }
 0x247   :  { %v207_v11 = vpop.xlane.xlu1 %206 }
 0x248   :  { %370 = vlog2.f32 %v207_v11 }
 0x24b   :  { %v213_v19 = vpop.xlane.xlu1 %212 }
 0x24c   :  { %372 = vlog2.f32 %v213_v19  ;;  %v210_v28 = vpop.xlane.xlu0 %209 }
 0x24d   :  { %374 = vlog2.f32 %v210_v28 }
 0x24f   :  { %v137_v31 = vpop.xlane.xlu1 %136 }
 0x250   :  { %v216_v32 = vpop.xlane.xlu0 %215  ;;  %v229_v35 = vsub.f32 %v137_v31, %v496_v25 }
 0x251   :  { %376 = vlog2.f32 %v216_v32 }
 0x252   :  { %v371_v33 = vpop.eup %370  ;;  %v233_v45 = vmul.f32 30.0, %v229_v35 }
 0x253   :  { %v218_v34 = vmul.f32 0.6931472, %v371_v33  ;;  %v143_v36 = vpop.xlane.xlu1 %142 }
 0x254   :  { %v140_v37 = vpop.xlane.xlu0 %139  ;;  %v231_v47 = vsub.f32 %v143_v36, %v505_v30  ;;  %v355_v30 = vsel %vm256_vm6, 1.0, %v427_v10 }
 0x255   :  { %v225_v38 = vadd.f32 %v218_v34, %v528_v49  ;;  %v230_v42 = vsub.f32 %v140_v37, %v503_v29 }
 0x256   :  { %v373_v41 = vpop.eup %372  ;;  %v235_v29 = vmul.f32 30.0, %v231_v47 }
 0x257   :  { %v375_v43 = vpop.eup %374  ;;  %v222_v44 = vmul.f32 0.6931472, %v373_v41  ;;  %v237_v5 = vsub.f32 %v225_v38, %v233_v45  ;;  %v159_v50 = vpop.xlane.xlu1 %158  ;;  %v234_v51 = vmul.f32 30.0, %v230_v42 }
 0x258   :  { %v220_v46 = vmul.f32 0.6931472, %v375_v43  ;;  %v146_v48 = vpop.xlane.xlu0 %145 }
 0x259   :  { %v232_v54 = vsub.f32 %v146_v48, %v518_v39  ;;  %v227_v49 = vadd.f32 %v222_v44, %v531_v52  ;;  %v274_v60 = vmul.f32 %v237_v5, %v159_v50 }
 0x25a   :  { %v226_v25 = vadd.f32 %v220_v46, %v533_v53 }
 0x25b   :  { %v377_v55 = vpop.eup %376  ;;  %v236_v63 = vmul.f32 30.0, %v232_v54  ;;  %v239_v0 = vsub.f32 %v227_v49, %v235_v29  ;;  %v165_v53 = vpop.xlane.xlu1 %164 }
 0x25c   :  { %v224_v56 = vmul.f32 0.6931472, %v377_v55  ;;  %v238_v57 = vsub.f32 %v226_v25, %v234_v51  ;;  %v162_v59 = vpop.xlane.xlu0 %161 }
 0x25d   :  { %v291_v61 = vadd.f32 %v162_v59, %v159_v50  ;;  %v276_v6 = vmul.f32 %v239_v0, %v165_v53 }
 0x25e   :  { %v228_v62 = vadd.f32 %v224_v56, %v537_v58  ;;  %v275_v1 = vmul.f32 %v238_v57, %v162_v59 }
 0x25f   :  { %v292_v4 = vadd.f32 %v291_v61, %v165_v53 }
 0x260   :  { %v240_v2 = vsub.f32 %v228_v62, %v236_v63  ;;  %v278_v3 = vadd.f32 %v275_v1, %v274_v60  ;;  %v168_v39 = vpop.xlane.xlu0 %167 }
 0x261   :  { %v268_v52 = vmul.f32 %v355_v30, %v168_v39 }
 0x262   :  { %v272_v7 = vmul.f32 %v355_v30, %v240_v2  ;;  %v279_v9 = vadd.f32 %v278_v3, %v276_v6 }
 0x263   :  { %v293_v8 = vadd.f32 %v292_v4, %v268_v52 }
 0x264   :  { %v277_v13 = vmul.f32 %v272_v7, %v268_v52 }
 0x265   :  { %v294_v14 = vrot.slane %v293_v8, 4 }
 0x266   :  { %v280_v15 = vadd.f32 %v279_v9, %v277_v13 }
 0x267   :  { %v295_v16 = vadd.f32 %v294_v14, %v293_v8 }
 0x268   :  { %v281_v10 = vrot.slane %v280_v15, 4 }
 0x269   :  { %v296_v17 = vrot.slane %v295_v16, 2 }
 0x26a   :  { %v282_v58 = vadd.f32 %v281_v10, %v280_v15 }
 0x26b   :  { %v297_v20 = vadd.f32 %v296_v17, %v295_v16 }
 0x26c   :  { %v283_v21 = vrot.slane %v282_v58, 2 }
 0x26d   :  { %v298_v22 = vrot.slane %v297_v20, 1 }
 0x26e   :  { %v284_v23 = vadd.f32 %v283_v21, %v282_v58 }
 0x26f   :  { %v299_v12 = vadd.f32 %v298_v22, %v297_v20 }
 0x270   :  { %v285_v26 = vrot.slane %v284_v23, 1 }
 0x271   :  { %v300_v11 = vadd.f32 %v299_v12, %v290_v24 }
 0x272   :  { %v286_v19 = vadd.f32 %v285_v26, %v284_v23 }
 0x273   :  { %301 = vst.msk [vmem:[#allocation3] sm:$0x1] %vm69_vm5, %v300_v11 }
 0x274   :  { %v287_v28 = vadd.f32 %v286_v19, %v273_v27 }
 0x276   :  { %289 = vst.msk [vmem:[#allocation2] sm:$0x1] %vm69_vm5, %v287_v28 }
 0x27a   :  { %v307_v31 = vld [vmem:[#allocation3] sm:$0x1] }
 0x27b   :  { %308 = vst.msk [vmem:[#allocation6] sm:$0x1] %vm69_vm5, %v307_v31 }
 0x27c   :  { %389 = shalt.err (!%p386_p4)
}
 0x27d   :  { %s390_s17 = scalar_lea.hbm %s618_s5, 16 }
 0x27e   :  { %p391_p5 = scmp.ne.s32.totalorder %s618_s5, %s390_s17  ;;  %p394_p6 = scmp.lt.u32.totalorder %s390_s17, %s618_s5 }
 0x280   :  { %p396_p7 = pnand %p394_p6, %p391_p5 }
 0x282   :  { %399 = shalt.err (!%p396_p7)
}
 0x283   :  { %328 = dma.vmem_to_hbm [thread:$0]  %s326_s10, 16, %s618_s5, [#allocation7]   ;;  %v305_v32 = vld [vmem:[#allocation2] sm:$0x1] }
 0x284   :  { %306 = vst.msk [vmem:[#allocation4] sm:$0x1] %vm69_vm5, %v305_v32  ;;  %s400_s24 = scalar_lea.vmem %s579_s12, 16  ;;  %s404_s25 = scalar_lea.vmem %s579_s12, 32 }
 0x285   :  { %p401_p8 = scmp.ne.s32.totalorder %s579_s12, %s400_s24  ;;  %p405_p9 = scmp.lt.s32.totalorder %s579_s12, %s579_s12 }
 0x286   :  { %p406_p10 = scmp.lt.s32.totalorder %s404_s25, %s400_s24 }
 0x288   :  { %p407_p11 = por %p406_p10, %p405_p9 }
 0x28a   :  { %p408_p12 = pnand %p407_p11, %p401_p8 }
 0x28c   :  { %411 = shalt.err (!%p408_p12)
}
 0x28d   :  { %s412_s1 = scalar_lea.hbm %s617_s4, 16 }
 0x28e   :  { %p413_p13 = scmp.ne.s32.totalorder %s617_s4, %s412_s1  ;;  %p416_p0 = scmp.lt.u32.totalorder %s412_s1, %s617_s4 }
 0x290   :  { %p418_p1 = pnand %p416_p0, %p413_p13 }
 0x292   :  { %421 = shalt.err (!%p418_p1)
}
 0x293   :  { %318 = dma.vmem_to_hbm [thread:$0]  %s579_s12, 16, %s617_s4, [#allocation5]  }
 0x294   :  { %422 = dma.done.wait [#allocation5], 16  }
 0x295   :  { %423 = vsyncadd [#allocation5], 4294967280 }
 0x296   :  { %424 = dma.done.wait [#allocation7], 16  }
 0x297   :  { %425 = vsyncadd [#allocation7], 4294967280 }
 0x298   :  { %335 = vsyncpa [#allocation5], 1 }
 0x299   :  { %336 = vsyncpa [#allocation7], 1 }

</bundles_post_ra>
